<compile_context>
chip_gen: v5e
topology: v5e:2x2
jax: 0.10.0
libtpu: 0.0.40
codegen_flags: <defaults>
</compile_context>

<pallas_src>
import functools

import jax
import jax.numpy as jnp
import numpy as np
from jax.experimental import pallas as pl
from jax.experimental.pallas import tpu as pltpu

BN_EPS = 1e-5
NORM_EPS = 1e-12          # F.normalize default eps
LANES = 128               # fused / padded lane width
TK = 512                  # Din reduction tile (multiple of 128); sweepable per chip


def _fused_mlp_kernel(x_ref, wb_ref, w1_ref, w2_ref, vec_ref, mask_ref, o_ref, acc_ref,
                      *, norm):
    f32 = jnp.float32
    k = pl.program_id(0)

    @pl.when(k == 0)
    def _():
        acc_ref[...] = jnp.zeros_like(acc_ref)

    # Backbones, all experts in one MXU pass: bf16 x bf16 -> f32 accumulate (fast path),
    # accumulated across Din tiles in a resident f32 scratch.
    acc_ref[...] += jnp.dot(x_ref[...], wb_ref[...], preferred_element_type=f32)

    @pl.when(k == pl.num_programs(0) - 1)
    def _():
        vec = vec_ref[...]                                 # (8, 128) packed bias/affine slab
        feat = acc_ref[...] + vec[0:1, :]                  # backbone bias

        # MLP.head[0]: Linear(F, F) per expert == one block-diagonal (128,128) matmul
        h = jnp.dot(feat, w1_ref[...], preferred_element_type=f32) + vec[1:2, :]

        # MLP.head[1]: BatchNorm1d, training mode, one-pass batch stats (biased variance).
        # Padded columns are exactly zero -> stats 0/0+eps -> stay zero (no NaNs).
        inv_b = 1.0 / h.shape[0]
        mean = jnp.sum(h, axis=0, keepdims=True) * inv_b
        var = jnp.sum(h * h, axis=0, keepdims=True) * inv_b - mean * mean
        h = (h - mean) * jax.lax.rsqrt(var + BN_EPS)
        h = h * vec[2:3, :] + vec[3:4, :]

        # MLP.head[2]: ReLU
        h = jnp.maximum(h, 0.0)

        # MLP.head[3]: Linear(F, C) per expert == one block-packed (128,128) matmul.
        out = jnp.dot(h, w2_ref[...], preferred_element_type=f32) + vec[4:5, :]

        if norm:
            # F.normalize(dim=1) per expert via one MXU pass over a 0/1 same-block mask:
            # ss[:, j] = sum of out^2 over columns in j's expert block (0 on pad columns,
            # where out is 0 anyway so the huge rsqrt scale is harmless).
            ss = jnp.dot(out * out, mask_ref[...], preferred_element_type=f32)
            out = out * jax.lax.rsqrt(jnp.maximum(ss, NORM_EPS * NORM_EPS))

        o_ref[...] = out.astype(o_ref.dtype)               # (B, 128) lane-dense, unmasked store


def fuse_params(p):
    """Fold the per-expert parameters into lane-dense, padded, fused operands."""
    E, d_in, F = p["wb"].shape
    C = p["w2"].shape[2]
    EF, EC = E * F, E * C
    f32 = jnp.float32

    # Pad Din up to a multiple of the reduction tile (zero rows contribute nothing).
    d_pad = ((d_in + TK - 1) // TK) * TK

    # Backbone weights, concatenated on the output axis, zero-padded, kept bf16 end-to-end.
    wb_cat = jnp.concatenate([p["wb"][e] for e in range(E)], axis=1)           # (Din, 3F) bf16
    wb = jnp.zeros((d_pad, LANES), jnp.bfloat16).at[:d_in, :EF].set(wb_cat)

    # Head Linear1 as a block-diagonal (128, 128) f32 matrix.
    w1 = jnp.zeros((LANES, LANES), f32)
    for e in range(E):
        w1 = w1.at[e * F:(e + 1) * F, e * F:(e + 1) * F].set(p["w1"][e])

    # Head Linear2 block-packed: rows e*F.. -> columns e*C.., zero elsewhere.
    w2 = jnp.zeros((LANES, LANES), f32)
    for e in range(E):
        w2 = w2.at[e * F:(e + 1) * F, e * C:(e + 1) * C].set(p["w2"][e])

    # All per-feature vectors packed into one (8, 128) slab: one DMA instead of five.
    vec = jnp.zeros((8, LANES), f32)
    vec = vec.at[0, :EF].set(jnp.concatenate([p["bb"][e, 0] for e in range(E)]))
    vec = vec.at[1, :EF].set(jnp.concatenate([p["b1"][e, 0] for e in range(E)]))
    vec = vec.at[2, :].set(jnp.ones((LANES,), f32))     # gamma (pad value irrelevant)
    vec = vec.at[2, :EF].set(jnp.concatenate([p["gamma"][e, 0] for e in range(E)]))
    vec = vec.at[3, :EF].set(jnp.concatenate([p["beta"][e, 0] for e in range(E)]))
    vec = vec.at[4, :EC].set(jnp.concatenate([p["b2"][e, 0] for e in range(E)]))

    # Constant same-expert-block mask for the MXU-based F.normalize reduction.
    mask_np = np.zeros((LANES, LANES), np.float32)
    for e in range(E):
        mask_np[e * C:(e + 1) * C, e * C:(e + 1) * C] = 1.0
    mask = jnp.asarray(mask_np)

    return {"wb": wb, "w1": w1, "w2": w2, "vec": vec, "mask": mask}


def sade_forward(x_nchw, fused, *, num_classes, n_expert=3, training=True, norm=False):
    B = x_nchw.shape[0]
    d_pad = fused["wb"].shape[0]

    # Glue: flatten NCHW and ship as bf16 (largest HBM operand); pad Din with zeros.
    x_flat = x_nchw.reshape(B, -1).astype(jnp.bfloat16)
    d_in = x_flat.shape[1]
    if d_in < d_pad:
        x_flat = jnp.pad(x_flat, ((0, 0), (0, d_pad - d_in)))

    k_steps = d_pad // TK
    kernel = functools.partial(_fused_mlp_kernel, norm=norm)

    out_pad = pl.pallas_call(
        kernel,
        out_shape=jax.ShapeDtypeStruct((B, LANES), jnp.float32),
        grid_spec=pltpu.PrefetchScalarGridSpec(
            num_scalar_prefetch=0,
            grid=(k_steps,),                                      # Din reduction axis
            in_specs=[
                pl.BlockSpec((B, TK), lambda k: (0, k)),          # x tile (bf16)
                pl.BlockSpec((TK, LANES), lambda k: (k, 0)),      # fused Wb tile (bf16)
                pl.BlockSpec((LANES, LANES), lambda k: (0, 0)),   # block-diag W1 (resident)
                pl.BlockSpec((LANES, LANES), lambda k: (0, 0)),   # block-packed W2 (resident)
                pl.BlockSpec((8, LANES), lambda k: (0, 0)),       # packed bias/affine slab
                pl.BlockSpec((LANES, LANES), lambda k: (0, 0)),   # normalize block mask
            ],
            out_specs=pl.BlockSpec((B, LANES), lambda k: (0, 0)),
            scratch_shapes=[pltpu.VMEM((B, LANES), jnp.float32)], # f32 backbone accumulator
        ),
        # Reduction axis: accumulator + epilogue gating -> "arbitrary".  The batch is never
        # split (BatchNorm batch stats).  Scoped-VMEM limit set explicitly (safe on all chips;
        # K-tiling keeps the resident footprint tiny anyway).
        compiler_params=pltpu.CompilerParams(
            dimension_semantics=("arbitrary",),
            vmem_limit_bytes=32 * 1024 * 1024,
        ),
    )(x_flat, fused["wb"], fused["w1"], fused["w2"], fused["vec"], fused["mask"])

    per_expert = out_pad[:, :n_expert * num_classes].reshape(B, n_expert, num_classes)
    if training:
        return per_expert                    # == torch.stack([x_1, x_2, x_3], dim=1)
    return jnp.sum(per_expert, axis=1)       # eval: x_1 + x_2 + x_3


def init_params(key, d_in, feature_dim, num_classes):
    ks = jax.random.split(key, 6)
    scale_b = 1.0 / np.sqrt(d_in)
    scale_1 = 1.0 / np.sqrt(feature_dim)
    return {
        # Backbone weights stored bf16 (HBM-traffic dominant operand); heads stay f32.
        "wb": jax.random.uniform(ks[0], (3, d_in, feature_dim), jnp.float32,
                                 -scale_b, scale_b).astype(jnp.bfloat16),
        "bb": jax.random.uniform(ks[1], (3, 1, feature_dim), jnp.float32, -scale_b, scale_b),
        "w1": jax.random.uniform(ks[2], (3, feature_dim, feature_dim), jnp.float32, -scale_1, scale_1),
        "b1": jax.random.uniform(ks[3], (3, 1, feature_dim), jnp.float32, -scale_1, scale_1),
        "gamma": jnp.ones((3, 1, feature_dim), jnp.float32),
        "beta": jnp.zeros((3, 1, feature_dim), jnp.float32),
        "w2": jax.random.uniform(ks[4], (3, feature_dim, num_classes), jnp.float32, -scale_1, scale_1),
        "b2": jax.random.uniform(ks[5], (3, 1, num_classes), jnp.float32, -scale_1, scale_1),
    }


def _reference(x_nchw, p, training=True, norm=False):
    B = x_nchw.shape[0]
    # Match the kernel's bf16 activation/weight quantization, math in f32.
    xf = x_nchw.reshape(B, -1).astype(jnp.bfloat16).astype(jnp.float32)
    outs = []
    for e in range(3):
        feat = xf @ p["wb"][e].astype(jnp.float32) + p["bb"][e]
        h = feat @ p["w1"][e] + p["b1"][e]
        mean = jnp.mean(h, axis=0, keepdims=True)
        var = jnp.mean((h - mean) ** 2, axis=0, keepdims=True)
        h = (h - mean) * jax.lax.rsqrt(var + BN_EPS) * p["gamma"][e] + p["beta"][e]
        h = jnp.maximum(h, 0.0)
        o = h @ p["w2"][e] + p["b2"][e]
        if norm:
            nrm = jnp.sqrt(jnp.sum(o * o, axis=-1, keepdims=True))
            o = o / jnp.maximum(nrm, NORM_EPS)
        outs.append(o)
    return jnp.stack(outs, axis=1) if training else (outs[0] + outs[1] + outs[2])


if __name__ == "__main__":
    key = jax.random.PRNGKey(0)
    kx, kp = jax.random.split(key)

    B, Cin, H, W = 8, 4, 16, 16
    feature_dim, num_classes = 32, 10
    d_in = Cin * H * W

    x = jax.random.normal(kx, (B, Cin, H, W), jnp.float32)
    params = init_params(kp, d_in, feature_dim, num_classes)
    fused = fuse_params(params)

    out_train = jax.block_until_ready(
        sade_forward(x, fused, num_classes=num_classes, training=True))
    out_eval = jax.block_until_ready(
        sade_forward(x, fused, num_classes=num_classes, training=False))
    out_norm = jax.block_until_ready(
        sade_forward(x, fused, num_classes=num_classes, training=True, norm=True))

    ref_train = _reference(x, params, training=True, norm=False)
    ref_eval = _reference(x, params, training=False, norm=False)
    ref_norm = _reference(x, params, training=True, norm=True)

    assert out_train.shape == (B, 3, num_classes)
    assert out_eval.shape == (B, num_classes)
    assert out_norm.shape == (B, 3, num_classes)
    np.testing.assert_allclose(np.asarray(out_train), np.asarray(ref_train), rtol=3e-4, atol=3e-4)
    np.testing.assert_allclose(np.asarray(out_eval), np.asarray(ref_eval), rtol=3e-4, atol=3e-4)
    np.testing.assert_allclose(np.asarray(out_norm), np.asarray(ref_norm), rtol=3e-4, atol=3e-4)

    print("KERNEL_OK")
</pallas_src>

<mosaic_0001>
module attributes {stable_mosaic.version = 11 : i64} {
  func.func @_fused_mlp_kernel(%arg0: i32, %arg1: memref<8x512xbf16, #tpu.memory_space<vmem>>, %arg2: memref<512x128xbf16, #tpu.memory_space<vmem>>, %arg3: memref<128x128xf32, #tpu.memory_space<vmem>>, %arg4: memref<128x128xf32, #tpu.memory_space<vmem>>, %arg5: memref<8x128xf32, #tpu.memory_space<vmem>>, %arg6: memref<128x128xf32, #tpu.memory_space<vmem>>, %arg7: memref<8x128xf32, #tpu.memory_space<vmem>>, %arg8: memref<8x128xf32, #tpu.memory_space<vmem>>) attributes {dimension_semantics = [#tpu.dimension_semantics<arbitrary>], iteration_bounds = array<i64: 2>, scalar_prefetch = 0 : i64, scratch_operands = 1 : i64, tpu.core_type = #tpu.core_type<tc>, window_params = [{transform_indices = @transform_0, window_bounds = array<i64: 8, 512>}, {transform_indices = @transform_1, window_bounds = array<i64: 512, 128>}, {pipeline_mode = #tpu.pipeline_mode<synchronous>, transform_indices = @transform_2, window_bounds = array<i64: 128, 128>}, {pipeline_mode = #tpu.pipeline_mode<synchronous>, transform_indices = @transform_3, window_bounds = array<i64: 128, 128>}, {pipeline_mode = #tpu.pipeline_mode<synchronous>, transform_indices = @transform_4, window_bounds = array<i64: 8, 128>}, {pipeline_mode = #tpu.pipeline_mode<synchronous>, transform_indices = @transform_5, window_bounds = array<i64: 128, 128>}, {pipeline_mode = #tpu.pipeline_mode<synchronous>, transform_indices = @transform_6, window_bounds = array<i64: 8, 128>}]} {
    %c0_i32 = arith.constant 0 : i32
    %0 = arith.cmpi eq, %arg0, %c0_i32 : i32
    %1 = arith.extui %0 : i1 to i32
    %c0_i32_0 = arith.constant 0 : i32
    %2 = arith.cmpi ne, %1, %c0_i32_0 : i32
    scf.if %2 {
      %cst_9 = arith.constant 0.000000e+00 : f32
      %12 = vector.broadcast %cst_9 : f32 to vector<8x128xf32>
      %c0_10 = arith.constant 0 : index
      %c0_11 = arith.constant 0 : index
      %13 = vector.load %arg8[%c0_10, %c0_11] : memref<8x128xf32, #tpu.memory_space<vmem>>, vector<8x128xf32>
      tpu.vector_store %arg8[%c0_10, %c0_11], %12 {strides = array<i32>} : memref<8x128xf32, #tpu.memory_space<vmem>>, vector<8x128xf32>,
    } else {
    }
    %c0 = arith.constant 0 : index
    %c0_1 = arith.constant 0 : index
    %3 = vector.load %arg8[%c0, %c0_1] : memref<8x128xf32, #tpu.memory_space<vmem>>, vector<8x128xf32>
    %c0_2 = arith.constant 0 : index
    %c0_3 = arith.constant 0 : index
    %4 = vector.load %arg1[%c0_2, %c0_3] : memref<8x512xbf16, #tpu.memory_space<vmem>>, vector<8x512xbf16>
    %c0_4 = arith.constant 0 : index
    %c0_5 = arith.constant 0 : index
    %5 = vector.load %arg2[%c0_4, %c0_5] : memref<512x128xbf16, #tpu.memory_space<vmem>>, vector<512x128xbf16>
    %cst = arith.constant dense<0.000000e+00> : vector<8x128xf32>
    %6 = tpu.matmul %4, %5, %cst {dimension_numbers = #tpu.dot_dimension_numbers<[1], [0], [0], [1], [0, 0, 1, 1], [], []>} : vector<8x512xbf16>, vector<512x128xbf16>, vector<8x128xf32> -> vector<8x128xf32>
    %7 = arith.addf %3, %6 : vector<8x128xf32>
    %c0_6 = arith.constant 0 : index
    %c0_7 = arith.constant 0 : index
    %8 = vector.load %arg8[%c0_6, %c0_7] : memref<8x128xf32, #tpu.memory_space<vmem>>, vector<8x128xf32>
    tpu.vector_store %arg8[%c0_6, %c0_7], %7 {strides = array<i32>} : memref<8x128xf32, #tpu.memory_space<vmem>>, vector<8x128xf32>,
    %c1_i32 = arith.constant 1 : i32
    %9 = arith.cmpi eq, %arg0, %c1_i32 : i32
    %10 = arith.extui %9 : i1 to i32
    %c0_i32_8 = arith.constant 0 : i32
    %11 = arith.cmpi ne, %10, %c0_i32_8 : i32
    scf.if %11 {
      %c0_9 = arith.constant 0 : index
      %c0_10 = arith.constant 0 : index
      %12 = vector.load %arg5[%c0_9, %c0_10] : memref<8x128xf32, #tpu.memory_space<vmem>>, vector<8x128xf32>
      %c0_11 = arith.constant 0 : index
      %c0_12 = arith.constant 0 : index
      %13 = vector.load %arg8[%c0_11, %c0_12] : memref<8x128xf32, #tpu.memory_space<vmem>>, vector<8x128xf32>
      %14 = vector.extract_strided_slice %12 {offsets = [0, 0], sizes = [1, 128], strides = [1, 1]} : vector<8x128xf32> to vector<1x128xf32>
      %15 = vector.broadcast %14 : vector<1x128xf32> to vector<8x128xf32>
      %16 = arith.addf %13, %15 : vector<8x128xf32>
      %c0_13 = arith.constant 0 : index
      %c0_14 = arith.constant 0 : index
      %17 = vector.load %arg3[%c0_13, %c0_14] : memref<128x128xf32, #tpu.memory_space<vmem>>, vector<128x128xf32>
      %cst_15 = arith.constant dense<0.000000e+00> : vector<8x128xf32>
      %18 = tpu.matmul %16, %17, %cst_15 {dimension_numbers = #tpu.dot_dimension_numbers<[1], [0], [0], [1], [0, 0, 1, 1], [], []>} : vector<8x128xf32>, vector<128x128xf32>, vector<8x128xf32> -> vector<8x128xf32>
      %19 = vector.extract_strided_slice %12 {offsets = [1, 0], sizes = [1, 128], strides = [1, 1]} : vector<8x128xf32> to vector<1x128xf32>
      %20 = vector.broadcast %19 : vector<1x128xf32> to vector<8x128xf32>
      %21 = arith.addf %18, %20 : vector<8x128xf32>
      %cst_16 = arith.constant dense<0.000000e+00> : vector<128xf32>
      %22 = vector.multi_reduction <add>, %21, %cst_16 [0] : vector<8x128xf32> to vector<128xf32>
      %23 = vector.shape_cast %22 : vector<128xf32> to vector<1x128xf32>
      %cst_17 = arith.constant 1.250000e-01 : f32
      %24 = vector.broadcast %cst_17 : f32 to vector<1x128xf32>
      %25 = arith.mulf %23, %24 : vector<1x128xf32>
      %26 = arith.mulf %21, %21 : vector<8x128xf32>
      %cst_18 = arith.constant dense<0.000000e+00> : vector<128xf32>
      %27 = vector.multi_reduction <add>, %26, %cst_18 [0] : vector<8x128xf32> to vector<128xf32>
      %28 = vector.shape_cast %27 : vector<128xf32> to vector<1x128xf32>
      %cst_19 = arith.constant 1.250000e-01 : f32
      %29 = vector.broadcast %cst_19 : f32 to vector<1x128xf32>
      %30 = arith.mulf %28, %29 : vector<1x128xf32>
      %31 = arith.mulf %25, %25 : vector<1x128xf32>
      %32 = arith.subf %30, %31 : vector<1x128xf32>
      %33 = vector.broadcast %25 : vector<1x128xf32> to vector<8x128xf32>
      %34 = arith.subf %21, %33 : vector<8x128xf32>
      %cst_20 = arith.constant 9.99999974E-6 : f32
      %35 = vector.broadcast %cst_20 : f32 to vector<1x128xf32>
      %36 = arith.addf %32, %35 : vector<1x128xf32>
      %37 = math.rsqrt %36 : vector<1x128xf32>
      %38 = vector.broadcast %37 : vector<1x128xf32> to vector<8x128xf32>
      %39 = arith.mulf %34, %38 : vector<8x128xf32>
      %40 = vector.extract_strided_slice %12 {offsets = [2, 0], sizes = [1, 128], strides = [1, 1]} : vector<8x128xf32> to vector<1x128xf32>
      %41 = vector.broadcast %40 : vector<1x128xf32> to vector<8x128xf32>
      %42 = arith.mulf %39, %41 : vector<8x128xf32>
      %43 = vector.extract_strided_slice %12 {offsets = [3, 0], sizes = [1, 128], strides = [1, 1]} : vector<8x128xf32> to vector<1x128xf32>
      %44 = vector.broadcast %43 : vector<1x128xf32> to vector<8x128xf32>
      %45 = arith.addf %42, %44 : vector<8x128xf32>
      %cst_21 = arith.constant 0.000000e+00 : f32
      %46 = vector.broadcast %cst_21 : f32 to vector<8x128xf32>
      %47 = arith.maximumf %45, %46 : vector<8x128xf32>
      %c0_22 = arith.constant 0 : index
      %c0_23 = arith.constant 0 : index
      %48 = vector.load %arg4[%c0_22, %c0_23] : memref<128x128xf32, #tpu.memory_space<vmem>>, vector<128x128xf32>
      %cst_24 = arith.constant dense<0.000000e+00> : vector<8x128xf32>
      %49 = tpu.matmul %47, %48, %cst_24 {dimension_numbers = #tpu.dot_dimension_numbers<[1], [0], [0], [1], [0, 0, 1, 1], [], []>} : vector<8x128xf32>, vector<128x128xf32>, vector<8x128xf32> -> vector<8x128xf32>
      %50 = vector.extract_strided_slice %12 {offsets = [4, 0], sizes = [1, 128], strides = [1, 1]} : vector<8x128xf32> to vector<1x128xf32>
      %51 = vector.broadcast %50 : vector<1x128xf32> to vector<8x128xf32>
      %52 = arith.addf %49, %51 : vector<8x128xf32>
      %c0_25 = arith.constant 0 : index
      %c0_26 = arith.constant 0 : index
      %53 = vector.load %arg7[%c0_25, %c0_26] : memref<8x128xf32, #tpu.memory_space<vmem>>, vector<8x128xf32>
      tpu.vector_store %arg7[%c0_25, %c0_26], %52 {strides = array<i32>} : memref<8x128xf32, #tpu.memory_space<vmem>>, vector<8x128xf32>,
    } else {
    }
    return
  }
  func.func @transform_0(%arg0: i32) -> (i32, i32) {
    %c0_i32 = arith.constant 0 : i32
    %c0_i32_0 = arith.constant 0 : i32
    return %c0_i32, %arg0 : i32, i32
  }
  func.func @transform_1(%arg0: i32) -> (i32, i32) {
    %c0_i32 = arith.constant 0 : i32
    %c0_i32_0 = arith.constant 0 : i32
    return %arg0, %c0_i32 : i32, i32
  }
  func.func @transform_2(%arg0: i32) -> (i32, i32) {
    %c0_i32 = arith.constant 0 : i32
    %c0_i32_0 = arith.constant 0 : i32
    %c0_i32_1 = arith.constant 0 : i32
    return %c0_i32, %c0_i32_0 : i32, i32
  }
  func.func @transform_3(%arg0: i32) -> (i32, i32) {
    %c0_i32 = arith.constant 0 : i32
    %c0_i32_0 = arith.constant 0 : i32
    %c0_i32_1 = arith.constant 0 : i32
    return %c0_i32, %c0_i32_0 : i32, i32
  }
  func.func @transform_4(%arg0: i32) -> (i32, i32) {
    %c0_i32 = arith.constant 0 : i32
    %c0_i32_0 = arith.constant 0 : i32
    %c0_i32_1 = arith.constant 0 : i32
    return %c0_i32, %c0_i32_0 : i32, i32
  }
  func.func @transform_5(%arg0: i32) -> (i32, i32) {
    %c0_i32 = arith.constant 0 : i32
    %c0_i32_0 = arith.constant 0 : i32
    %c0_i32_1 = arith.constant 0 : i32
    return %c0_i32, %c0_i32_0 : i32, i32
  }
  func.func @transform_6(%arg0: i32) -> (i32, i32) {
    %c0_i32 = arith.constant 0 : i32
    %c0_i32_0 = arith.constant 0 : i32
    %c0_i32_1 = arith.constant 0 : i32
    return %c0_i32, %c0_i32_0 : i32, i32
  }
}

</mosaic_0001>

<bundles_post_ra>
// kernel: tpu_custom_call.1
= control target key start
LH: loop header
LB: loop body
LE: loop exit
PB: predicated region body
PF: predicated region fallthrough
CT: control target
= control target key end

     0   :  { %s1746_s0 = inlined_call_operand.hbm [shape: bf16[8,1024], index: 0, kind: input, shape index: {}]   ;;  %s1747_s1 = inlined_call_operand.hbm [shape: bf16[1024,128], index: 1, kind: input, shape index: {}]   ;;  %s1748_s2 = inlined_call_operand.hbm [shape: f32[128,128], index: 2, kind: input, shape index: {}]   ;;  %s1749_s3 = inlined_call_operand.hbm [shape: f32[128,128], index: 3, kind: input, shape index: {}]   ;;  %s1750_s4 = inlined_call_operand.hbm [shape: f32[8,128], index: 4, kind: input, shape index: {}]   ;;  %s1751_s5 = inlined_call_operand.hbm [shape: f32[128,128], index: 5, kind: input, shape index: {}]   ;;  %s1752_s6 = inlined_call_operand.hbm [shape: f32[8,128], index: 6, kind: output, shape index: {}]  }
   0x1   :  { %1753 = sst [smem:[#allocation21_spill]] %s1748_s2 }
   0x2   :  { %11 = vsyncpa [#allocation4], 0 }
   0x3   :  { %13 = vsyncpa [#allocation4 + $0x1], 0 }
   0x4   :  { %14 = vsyncpa [#allocation7], 0 }
   0x5   :  { %16 = vsyncpa [#allocation7 + $0x1], 0 }
   0x6   :  { %17 = vsyncpa [#allocation10], 0 }
   0x7   :  { %18 = vsyncpa [#allocation13], 0 }
   0x8   :  { %19 = vsyncpa [#allocation5], 0  ;;  %s1532_s21 = smov 0   ;;  %s1534_s22 = smov 0  }
   0x9   :  { %s1536_s23 = smov 0   ;;  %s1538_s24 = smov 0  }
   0xa LB: > { %s1754_s2 = sld [smem:[#allocation21_spill]]  ;;  %s1556_s28 = sadd.s32 4294967295, %s1485_s24   ;;  %s1485_s24 = sphi %s1538_s24, %s1762_s24   ;;  %s1481_s23 = sphi %s1536_s23, %s1761_s23   ;;  %s1477_s22 = sphi %s1534_s22, %s1760_s22   ;;  %s1473_s21 = sphi %s1532_s21, %s1759_s21  }
   0xb   : > { %p937_p0 = scmp.ge.s32.totalorder %s1485_s24, 1  ;;  %p46_p1 = scmp.eq.s32.totalorder %s1556_s28, 0 }
   0xc   : > { %p187_p2 = scmp.lt.s32.totalorder %s1485_s24, 3  ;;  %p938_p3 = scmp.ne.s32.totalorder %s1556_s28, 0 }
   0xd   : > { %s1487_s30 = smov [#allocation8]   ;;  %s212_s10 = sshll.u32 %s1749_s3, 4  ;;  %s213_s10 = int_to_ptr.hbm [resolvable:$true] %s212_s10 }
   0xe   : > { %p1562_p4 = pnand %p937_p0, %p187_p2  ;;  %s200_s7 = sshll.u32 %s1487_s30, 4  ;;  %s201_s7 = int_to_ptr.vmem [resolvable:$true] %s200_s7 }
   0xf   : > { %s227_s14 = sshll.u32 %s1750_s4, 4  ;;  %s1488_s15 = smov [#allocation9]   ;;  %s228_s14 = int_to_ptr.hbm [resolvable:$true] %s227_s14 }
  0x10   : > { %s198_s27 = sshll.u32 %s1754_s2, 4  ;;  %p1148_p5 = pneg %p1562_p4  ;;  %s199_s27 = int_to_ptr.hbm [resolvable:$true] %s198_s27 }
  0x11   : > { %s214_s16 = sshll.u32 %s1488_s15, 4  ;;  %s1489_s17 = smov 128   ;;  %s215_s16 = int_to_ptr.vmem [resolvable:$true] %s214_s16 }
  0x12   : > { %p1573_p6 = pnand %p1148_p5, %p46_p1  ;;  %s1490_s18 = smov 8  }
  0x13   : > { %s238_s25 = sshll.u32 %s1751_s5, 4  ;;  %s1491_s26 = smov [#allocation11]   ;;  %s239_s25 = int_to_ptr.hbm [resolvable:$true] %s238_s25 }
  0x14   : > { %1151 = dma.hbm_to_vmem [thread:$0]  (!%p1573_p6), %s199_s27, 2048, %s201_s7, [#allocation7], %s1489_s17, %s1489_s17, %s1490_s18  }
  0x15   : > { %1154 = dma.hbm_to_vmem [thread:$0]  (!%p1573_p6), %s213_s10, 2048, %s215_s16, [#allocation10], %s1489_s17, %s1489_s17, %s1490_s18  }
  0x16   : > { %s229_s30 = sshll.u32 %s1491_s26, 4  ;;  %s1492_s27 = smov [#allocation12]   ;;  %s230_s30 = int_to_ptr.vmem [resolvable:$true] %s229_s30 }
  0x17   : > { %1157 = dma.hbm_to_vmem [thread:$0]  (!%p1573_p6), %s228_s14, 128, %s230_s30, [#allocation10]  }
  0x18   : > { %s240_s7 = sshll.u32 %s1492_s27, 4  ;;  %s1592_s8 = sadd.s32 1, %s1485_s24   ;;  %s241_s7 = int_to_ptr.vmem [resolvable:$true] %s240_s7 }
  0x19   : > { %1160 = dma.hbm_to_vmem [thread:$0]  (!%p1573_p6), %s239_s25, 2048, %s241_s7, [#allocation13], %s1489_s17, %s1489_s17, %s1490_s18  }
  0x1a   : > { %s32_s9 = sadd.s32 1, %s1481_s23  ;;  %s29_s10 = ssub.s32 %s1485_s24, %s1592_s8 }
  0x1b   : > { %p39_p7 = scmp.ne.s32.totalorder %s1481_s23, %s1477_s22  ;;  %p30_p8 = scmp.eq.s32.totalorder %s29_s10, 0 }
  0x1c   : > { %p40_p9 = scmp.eq.s32.totalorder %s1485_s24, 0  ;;  %p45_p10 = scmp.ne.s32.totalorder %s1477_s22, %s1473_s21 }
  0x1d   : > { %p1172_p11 = scmp.lt.s32.totalorder %s1485_s24, 2  ;;  %s1613_s11 = sand.u32 1, %s1481_s23  }
  0x1e   : > { %s1604_s12 = scalar_select %p30_p8, %s1481_s23, %s32_s9  }
  0x1f   : > { %p41_p12 = por %p40_p9, %p39_p7  ;;  %p1608_p13 = por %p46_p1, %p45_p10 }
  0x20   : > { %s1090_s14 = sshll.u32 %s1485_s24, 4  ;;  %s943_s15 = sshll.u32 %s1613_s11, 4 }
  0x21   : > { %s263_s21 = scalar_lea.hbm %s1746_s0, %s1090_s14  ;;  %s258_s19 = scalar_lea.vmem [#allocation3], %s943_s15 }
  0x22   : > { %s265_s18 = sshll.u32 %s263_s21, 4  ;;  %s267_s20 = sshll.u32 %s258_s19, 4  ;;  %s266_s18 = int_to_ptr.hbm [resolvable:$true] %s265_s18  ;;  %s268_s20 = int_to_ptr.vmem [resolvable:$true] %s267_s20 }
  0x23   : > { %p1622_p0 = pnand %p1172_p11, %p41_p12  ;;  %s946_s26 = sshll.u32 %s1613_s11, 8 }
  0x24   : > { %s274_s30 = sand.u32 1, %s1485_s24   ;;  %s278_s27 = scalar_lea.vmem [#allocation6], %s946_s26 }
  0x25   : > { %s286_s7 = sshll.u32 %s278_s27, 4  ;;  %s255_s9 = scalar_lea.sflag [#allocation4], %s1613_s11  ;;  %s287_s7 = int_to_ptr.vmem [resolvable:$true] %s286_s7 }
  0x26   : > { %s1343_s10 = sshra.s32 %s266_s18, 4  ;;  %p1347_p5 = pneg %p1622_p0  ;;  %s1344_s10 = int_to_ptr.hbm [resolvable:$true] %s1343_s10 }
  0x27   : > { %s1345_s14 = scalar_lea.hbm %s1344_s10, 16  ;;  %s1350_s17 = scalar_lea.hbm %s1746_s0, 32 }
  0x28   : > { %p1346_p2 = scmp.ne.s32.totalorder %s1344_s10, %s1345_s14  ;;  %p1351_p8 = scmp.lt.s32.totalorder %s1344_s10, %s1746_s0 }
  0x29   : > { %p1352_p9 = scmp.lt.s32.totalorder %s1350_s17, %s1345_s14 }
  0x2a   : > { %p1348_p6 = pnand %p1347_p5, %p1346_p2 }
  0x2b   : > { %p1353_p10 = por %p1352_p9, %p1351_p8 }
  0x2c   : > { %p1349_p7 = pneg %p1348_p6 }
  0x2e   : > { %p1354_p11 = pnand %p1353_p10, %p1349_p7 }
  0x30   : > { %1357 = shalt.err (!%p1354_p11)
}
  0x31   : > { %1164 = dma.hbm_to_vmem [thread:$0]  (!%p1622_p0), %s266_s18, 256, %s268_s20, %s255_s9  }
  0x32   : > { %s1091_s11 = sshll.u32 %s1485_s24, 8  ;;  %s275_s2 = scalar_lea.sflag [#allocation7], %s274_s30 }
  0x33   : > { %s283_s15 = scalar_lea.hbm %s1747_s1, %s1091_s11  ;;  %s1380_s18 = scalar_lea.hbm %s1747_s1, 512 }
  0x34   : > { %s284_s16 = sshll.u32 %s283_s15, 4  ;;  %s285_s16 = int_to_ptr.hbm [resolvable:$true] %s284_s16 }
  0x35   : > { %s1373_s21 = sshra.s32 %s285_s16, 4  ;;  %s1374_s21 = int_to_ptr.hbm [resolvable:$true] %s1373_s21 }
  0x36   : > { %s1375_s10 = scalar_lea.hbm %s1374_s21, 256  ;;  %p1381_p7 = scmp.lt.s32.totalorder %s1374_s21, %s1747_s1 }
  0x37   : > { %p1376_p12 = scmp.ne.s32.totalorder %s1374_s21, %s1375_s10  ;;  %p1382_p8 = scmp.lt.s32.totalorder %s1380_s18, %s1375_s10 }
  0x39   : > { %p1378_p2 = pnand %p1376_p12, %p1347_p5  ;;  %p1383_p9 = por %p1382_p8, %p1381_p7 }
  0x3b   : > { %p1379_p6 = pneg %p1378_p2 }
  0x3d   : > { %p1384_p10 = pnand %p1383_p9, %p1379_p6 }
  0x3f   : > { %1387 = shalt.err (!%p1384_p10)
}
  0x40   : > { %s1493_s30 = smov 64   ;;  %s1494_s9 = smov 4  }
  0x41   : > { %1167 = dma.hbm_to_vmem [thread:$0]  (!%p1622_p0), %s285_s16, 4096, %s287_s7, %s275_s2, %s1493_s30, %s1493_s30, %s1494_s9  }
  0x42   : > { %298 = sbr.rel (%p1562_p4) target bundleno = 603 (0x25b), region = 44  ;;  %s300_s19 = sand.u32 (!%p1562_p4), 1, %s1477_s22  }
  0x43   : > { %s950_s11 = sshll.u32 (!%p1562_p4), %s300_s19, 4  ;;  %s301_s26 = scalar_lea.sflag (!%p1562_p4), [#allocation4], %s300_s19 }
  0x44   : > { %s1660_s27 = scalar_lea.vmem (!%p1562_p4), [#allocation3], %s950_s11 }
  0x47   : > { %1448 = dma.done.wait (%p1608_p13), %s301_s26, 256  }
  0x48   : > { %1450 = vsyncadd (%p1608_p13), %s301_s26, 4294967040  ;;  %s310_s15 = sand.u32 1, %s1556_s28   ;;  %s951_s25 = sshll.u32 %s300_s19, 8 }
  0x49   : > { %s311_s2 = scalar_lea.sflag [#allocation7], %s310_s15  ;;  %s1667_s7 = scalar_lea.vmem [#allocation6], %s951_s25 }
  0x4a   : > { %1452 = dma.done.wait (%p1608_p13), %s311_s2, 4096  }
  0x4b   : > { %1454 = vsyncadd (%p1608_p13), %s311_s2, 4294963200 }
  0x4c   : > { %1456 = dma.done.wait (%p46_p1), [#allocation7], 2048  }
  0x4d   : > { %1458 = vsyncadd (%p46_p1), [#allocation7], 4294965248 }
  0x4e   : > { %1460 = dma.done.wait (%p46_p1), [#allocation10], 2176  }
  0x4f   : > { %1462 = vsyncadd (%p46_p1), [#allocation10], 4294965120 }
  0x50   : > { %1464 = dma.done.wait (%p46_p1), [#allocation13], 2048  }
  0x51   : > { %1466 = vsyncadd (%p46_p1), [#allocation13], 4294965248  ;;  %369 = sbr.rel (%p938_p3) target bundleno = 88 (0x58), region = 72 }
  0x56   : > { %v1495_v0 = vmov 0.0  }
  0x57   : > { %370 = vst [vmem:[#allocation2] sm:$0xff] %v1495_v0 }
  0x58 PF: > { %v1099_v1 = vld [vmem:[%s1667_s7 + $0x38] sm:$0xff]  ;;  %v1098_v5 = vld [vmem:[%s1667_s7 + $0x30] sm:$0xff]  ;;  %v1097_v9 = vld [vmem:[%s1667_s7 + $0x28] sm:$0xff]  ;;  %p1085_p1 = scmp.ne.s32.totalorder %s1556_s28, 1 }
  0x59   : > { %v1107_v2 = vld [vmem:[%s1667_s7 + $0x78] sm:$0xff]  ;;  %644 = vmatpush.bf16.msra.mxu0 %v1099_v1  ;;  %v1106_v6 = vld [vmem:[%s1667_s7 + $0x70] sm:$0xff]  ;;  %v1105_v10 = vld [vmem:[%s1667_s7 + $0x68] sm:$0xff] }
  0x5a   : > { %v1115_v3 = vld [vmem:[%s1667_s7 + $0xb8] sm:$0xff]  ;;  %657 = vmatpush.bf16.msra.mxu1 %v1107_v2  ;;  %v1114_v7 = vld [vmem:[%s1667_s7 + $0xb0] sm:$0xff]  ;;  %v1113_v11 = vld [vmem:[%s1667_s7 + $0xa8] sm:$0xff] }
  0x5b   : > { %v1123_v4 = vld [vmem:[%s1667_s7 + $0xf8] sm:$0xff]  ;;  %670 = vmatpush.bf16.msra.mxu2 %v1115_v3  ;;  %v1122_v8 = vld [vmem:[%s1667_s7 + $0xf0] sm:$0xff]  ;;  %v1121_v12 = vld [vmem:[%s1667_s7 + $0xe8] sm:$0xff] }
  0x5c   : > { %683 = vmatpush.bf16.msra.mxu3 %v1123_v4  ;;  %v1096_v13 = vld [vmem:[%s1667_s7 + $0x20] sm:$0xff]  ;;  %v1095_v17 = vld [vmem:[%s1667_s7 + $0x18] sm:$0xff]  ;;  %v1094_v21 = vld [vmem:[%s1667_s7 + $0x10] sm:$0xff] }
  0x5d   : > { %645 = vmatpush.bf16.msra.mxu0 %v1098_v5  ;;  %v1104_v14 = vld [vmem:[%s1667_s7 + $0x60] sm:$0xff]  ;;  %v1103_v18 = vld [vmem:[%s1667_s7 + $0x58] sm:$0xff]  ;;  %v1102_v22 = vld [vmem:[%s1667_s7 + $0x50] sm:$0xff] }
  0x5e   : > { %658 = vmatpush.bf16.msra.mxu1 %v1106_v6  ;;  %v1112_v15 = vld [vmem:[%s1667_s7 + $0xa0] sm:$0xff]  ;;  %v1111_v19 = vld [vmem:[%s1667_s7 + $0x98] sm:$0xff]  ;;  %v1110_v23 = vld [vmem:[%s1667_s7 + $0x90] sm:$0xff] }
  0x5f   : > { %671 = vmatpush.bf16.msra.mxu2 %v1114_v7  ;;  %v1120_v16 = vld [vmem:[%s1667_s7 + $0xe0] sm:$0xff]  ;;  %v1119_v20 = vld [vmem:[%s1667_s7 + $0xd8] sm:$0xff]  ;;  %v1118_v24 = vld [vmem:[%s1667_s7 + $0xd0] sm:$0xff] }
  0x60   : > { %684 = vmatpush.bf16.msra.mxu3 %v1122_v8  ;;  %v1093_v25 = vld [vmem:[%s1667_s7 + $0x8] sm:$0xff]  ;;  %v372_v27 = vld [vmem:[%s1660_s27] sm:$0xff]  ;;  %v371_v51 = vld [vmem:[#allocation2] sm:$0xff] }
  0x61   : > { %646 = vmatpush.bf16.msra.mxu0 %v1097_v9  ;;  %v1101_v26 = vld [vmem:[%s1667_s7 + $0x48] sm:$0xff]  ;;  %v440_v31 = vunpack.c.l.b16 %v372_v27  ;;  %v441_v32 = vunpack.c.h.b16 %v372_v27  ;;  %v1092_v33 = vld [vmem:[%s1667_s7] sm:$0xff] }
  0x62   : > { %659 = vmatpush.bf16.msra.mxu1 %v1105_v10  ;;  %v1109_v28 = vld [vmem:[%s1667_s7 + $0x88] sm:$0xff]  ;;  %v1100_v34 = vld [vmem:[%s1667_s7 + $0x40] sm:$0xff] }
  0x63   : > { %672 = vmatpush.bf16.msra.mxu2 %v1113_v11  ;;  %v1117_v29 = vld [vmem:[%s1667_s7 + $0xc8] sm:$0xff]  ;;  %v1108_v37 = vld [vmem:[%s1667_s7 + $0x80] sm:$0xff]  ;;  %v444_v39 = vpack.c.b16 %v440_v31, %v440_v31  ;;  %v445_v40 = vpack.c.b16 %v441_v32, %v441_v32 }
  0x64   : > { %685 = vmatpush.bf16.msra.mxu3 %v1121_v12  ;;  %v373_v30 = vld [vmem:[%s1660_s27 + $0x8] sm:$0xff]  ;;  %v1116_v38 = vld [vmem:[%s1667_s7 + $0xc0] sm:$0xff] }
  0x65   : > { %647 = vmatpush.bf16.msra.mxu0 %v1096_v13  ;;  %v442_v35 = vunpack.c.l.b16 %v373_v30  ;;  %v443_v36 = vunpack.c.h.b16 %v373_v30 }
  0x66   : > { %660 = vmatpush.bf16.msra.mxu1 %v1104_v14 }
  0x67   : > { %673 = vmatpush.bf16.msra.mxu2 %v1112_v15  ;;  %v446_v41 = vpack.c.b16 %v442_v35, %v442_v35  ;;  %v447_v42 = vpack.c.b16 %v443_v36, %v443_v36 }
  0x68   : > { %686 = vmatpush.bf16.msra.mxu3 %v1120_v16 }
  0x69   : > { %648 = vmatpush.bf16.msra.mxu0 %v1095_v17 }
  0x6a   : > { %661 = vmatpush.bf16.msra.mxu1 %v1103_v18 }
  0x6b   : > { %674 = vmatpush.bf16.msra.mxu2 %v1111_v19 }
  0x6c   : > { %687 = vmatpush.bf16.msra.mxu3 %v1119_v20 }
  0x6d   : > { %649 = vmatpush.bf16.msra.mxu0 %v1094_v21 }
  0x6e   : > { %662 = vmatpush.bf16.msra.mxu1 %v1102_v22 }
  0x6f   : > { %675 = vmatpush.bf16.msra.mxu2 %v1110_v23 }
  0x70   : > { %688 = vmatpush.bf16.msra.mxu3 %v1118_v24 }
  0x71   : > { %650 = vmatpush.bf16.msra.mxu0 %v1093_v25 }
  0x72   : > { %663 = vmatpush.bf16.msra.mxu1 %v1101_v26 }
  0x73   : > { %676 = vmatpush.bf16.msra.mxu2 %v1109_v28 }
  0x74   : > { %689 = vmatpush.bf16.msra.mxu3 %v1117_v29 }
  0x75   : > { %651 = vmatpush.bf16.msra.mxu0 %v1092_v33 }
  0x76   : > { %664 = vmatpush.bf16.msra.mxu1 %v1100_v34 }
  0x77   : > { %677 = vmatpush.bf16.msra.mxu2 %v1108_v37 }
  0x78   : > { %690 = vmatpush.bf16.msra.mxu3 %v1116_v38  ;;  %652 = vmatmul.bf16.vlgmr.msra.gmra.mxu0 %v444_v39 }
  0x79   : > { %665 = vmatmul.bf16.vlgmr.msra.gmra.mxu1 %v445_v40 }
  0x7a   : > { %678 = vmatmul.bf16.vlgmr.msra.gmra.mxu2 %v446_v41 }
  0x7b   : > { %691 = vmatmul.bf16.vlgmr.msra.gmra.mxu3 %v447_v42 }
  0xf5   : > { %v653_v43 = vpop.f32.mrf.mxu0 }
  0xf6   : > { %v666_v44 = vpop.f32.mrf.mxu1 }
  0xf7   : > { %v667_v45 = vadd.f32 %v666_v44, %v653_v43 }
  0xfd   : > { %v679_v46 = vpop.f32.mrf.mxu2  ;;  %v655_v49 = vpop.f32.mrf.mxu0 }
  0xfe   : > { %v692_v47 = vpop.f32.mrf.mxu3  ;;  %v680_v48 = vadd.f32 %v679_v46, %v667_v45  ;;  %v668_v50 = vpop.f32.mrf.mxu1 }
 0x100   : > { %v693_v52 = vadd.f32 %v692_v47, %v680_v48 }
 0x102   : > { %v696_v53 = vadd.f32 %v693_v52, %v371_v51  ;;  %701 = sbr.rel (%p1085_p1) target bundleno = 598 (0x256), region = 76 }
 0x104   : > { %697 = vst [vmem:[#allocation2] sm:$0xff] %v696_v53 }
 0x105   : > { %v681_v54 = vpop.f32.mrf.mxu2 }
 0x106   : > { %v694_v55 = vpop.f32.mrf.mxu3 }
 0x107   : > { %v721_v56 = vld [vmem:[#allocation8 + $0x78] sm:$0xff]  ;;  %v720_v57 = vld [vmem:[#allocation8 + $0x70] sm:$0xff]  ;;  %v719_v58 = vld [vmem:[#allocation8 + $0x68] sm:$0xff] }
 0x108   : > { %723 = vmatpush.msra.mxu0 %v721_v56  ;;  %v718_v59 = vld [vmem:[#allocation8 + $0x60] sm:$0xff]  ;;  %v717_v60 = vld [vmem:[#allocation8 + $0x58] sm:$0xff]  ;;  %v716_v61 = vld [vmem:[#allocation8 + $0x50] sm:$0xff] }
 0x109   : > { %v715_v62 = vld [vmem:[#allocation8 + $0x48] sm:$0xff]  ;;  %v714_v63 = vld [vmem:[#allocation8 + $0x40] sm:$0xff]  ;;  %v713_v0 = vld [vmem:[#allocation8 + $0x38] sm:$0xff] }
 0x10a   : > { %724 = vmatpush.msra.mxu0 %v720_v57  ;;  %v712_v1 = vld [vmem:[#allocation8 + $0x30] sm:$0xff]  ;;  %v711_v2 = vld [vmem:[#allocation8 + $0x28] sm:$0xff]  ;;  %v710_v3 = vld [vmem:[#allocation8 + $0x20] sm:$0xff] }
 0x10b   : > { %v1722_v4 = vld [vmem:[#allocation11] sm:$0xff]  ;;  %v709_v5 = vld [vmem:[#allocation8 + $0x18] sm:$0xff]  ;;  %v708_v6 = vld [vmem:[#allocation8 + $0x10] sm:$0xff] }
 0x10c   : > { %725 = vmatpush.msra.mxu0 %v719_v58  ;;  %v704_v7 = vperm.slane %v1722_v4, 0  ;;  %v703_v8 = vld [vmem:[#allocation2] sm:$0xff]  ;;  %v707_v9 = vld [vmem:[#allocation8 + $0x8] sm:$0xff]  ;;  %v706_v10 = vld [vmem:[#allocation8] sm:$0xff]  ;;  %v722_v19 = vperm.slane %v1722_v4, 1  ;;  %v773_v56 = vperm.slane %v1722_v4, 2 }
 0x10d   : > { %v793_v12 = vld [vmem:[#allocation9 + $0x78] sm:$0xff]  ;;  %v792_v13 = vld [vmem:[#allocation9 + $0x70] sm:$0xff]  ;;  %v791_v14 = vld [vmem:[#allocation9 + $0x68] sm:$0xff] }
 0x10e   : > { %726 = vmatpush.msra.mxu0 %v718_v59  ;;  %v705_v11 = vadd.f32 %v704_v7, %v703_v8  ;;  %795 = vmatpush.msra.mxu1 %v793_v12  ;;  %v790_v15 = vld [vmem:[#allocation9 + $0x60] sm:$0xff]  ;;  %v789_v16 = vld [vmem:[#allocation9 + $0x58] sm:$0xff]  ;;  %v788_v17 = vld [vmem:[#allocation9 + $0x50] sm:$0xff]  ;;  %v775_v59 = vperm.slane %v1722_v4, 3 }
 0x10f   : > { %v787_v18 = vld [vmem:[#allocation9 + $0x48] sm:$0xff]  ;;  %v786_v20 = vld [vmem:[#allocation9 + $0x40] sm:$0xff]  ;;  %v785_v21 = vld [vmem:[#allocation9 + $0x38] sm:$0xff] }
 0x110   : > { %727 = vmatpush.msra.mxu0 %v717_v60  ;;  %796 = vmatpush.msra.mxu1 %v792_v13  ;;  %v784_v24 = vld [vmem:[#allocation9 + $0x30] sm:$0xff]  ;;  %v783_v27 = vld [vmem:[#allocation9 + $0x28] sm:$0xff]  ;;  %v782_v30 = vld [vmem:[#allocation9 + $0x20] sm:$0xff] }
 0x111   : > { %v781_v33 = vld [vmem:[#allocation9 + $0x18] sm:$0xff]  ;;  %v780_v36 = vld [vmem:[#allocation9 + $0x10] sm:$0xff]  ;;  %v779_v38 = vld [vmem:[#allocation9 + $0x8] sm:$0xff] }
 0x112   : > { %728 = vmatpush.msra.mxu0 %v716_v61  ;;  %797 = vmatpush.msra.mxu1 %v791_v14  ;;  %v778_v41 = vld [vmem:[#allocation9] sm:$0xff] }
 0x114   : > { %729 = vmatpush.msra.mxu0 %v715_v62  ;;  %798 = vmatpush.msra.mxu1 %v790_v15 }
 0x116   : > { %730 = vmatpush.msra.mxu0 %v714_v63  ;;  %799 = vmatpush.msra.mxu1 %v789_v16  ;;  %v794_v63 = vperm.slane %v1722_v4, 4 }
 0x118   : > { %731 = vmatpush.msra.mxu0 %v713_v0  ;;  %800 = vmatpush.msra.mxu1 %v788_v17 }
 0x11a   : > { %732 = vmatpush.msra.mxu0 %v712_v1  ;;  %801 = vmatpush.msra.mxu1 %v787_v18 }
 0x11c   : > { %733 = vmatpush.msra.mxu0 %v711_v2  ;;  %802 = vmatpush.msra.mxu1 %v786_v20 }
 0x11e   : > { %734 = vmatpush.msra.mxu0 %v710_v3  ;;  %803 = vmatpush.msra.mxu1 %v785_v21 }
 0x120   : > { %735 = vmatpush.msra.mxu0 %v709_v5  ;;  %804 = vmatpush.msra.mxu1 %v784_v24 }
 0x122   : > { %736 = vmatpush.msra.mxu0 %v708_v6  ;;  %805 = vmatpush.msra.mxu1 %v783_v27 }
 0x124   : > { %737 = vmatpush.msra.mxu0 %v707_v9  ;;  %806 = vmatpush.msra.mxu1 %v782_v30 }
 0x126   : > { %738 = vmatpush.msra.mxu0 %v706_v10  ;;  %807 = vmatpush.msra.mxu1 %v781_v33 }
 0x127   : > { %739 = vmatmul.f32.vlgmr.msra.gmra.mxu0 %v705_v11 }
 0x128   : > { %808 = vmatpush.msra.mxu1 %v780_v36 }
 0x12a   : > { %809 = vmatpush.msra.mxu1 %v779_v38 }
 0x12c   : > { %810 = vmatpush.msra.mxu1 %v778_v41 }
 0x1a4   : > { %v740_v22 = vpop.f32.mrf.mxu0 }
 0x1a5   : > { %v741_v23 = vadd.f32 %v740_v22, %v722_v19 }
 0x1a7   : > { %v743_v25 = vrot.slane %v741_v23, 4  ;;  %v750_v26 = vmul.f32 %v741_v23, %v741_v23 }
 0x1a9   : > { %v744_v28 = vadd.f32 %v743_v25, %v741_v23  ;;  %v751_v29 = vrot.slane %v750_v26, 4 }
 0x1ab   : > { %v745_v31 = vrot.slane %v744_v28, 2  ;;  %v752_v32 = vadd.f32 %v751_v29, %v750_v26 }
 0x1ad   : > { %v746_v34 = vadd.f32 %v745_v31, %v744_v28  ;;  %v753_v35 = vrot.slane %v752_v32, 2 }
 0x1af   : > { %v754_v37 = vadd.f32 %v753_v35, %v752_v32  ;;  %v747_v39 = vrot.slane %v746_v34, 1 }
 0x1b1   : > { %v755_v40 = vrot.slane %v754_v37, 1  ;;  %v748_v42 = vadd.f32 %v747_v39, %v746_v34 }
 0x1b3   : > { %v756_v43 = vadd.f32 %v755_v40, %v754_v37  ;;  %v749_v44 = vmul.f32 0.125, %v748_v42 }
 0x1b5   : > { %v757_v45 = vmul.f32 0.125, %v756_v43  ;;  %v758_v46 = vmul.f32 %v749_v44, %v749_v44  ;;  %v760_v55 = vsub.f32 %v741_v23, %v749_v44 }
 0x1b7   : > { %v759_v47 = vsub.f32 %v757_v45, %v758_v46 }
 0x1b9   : > { %v761_v48 = vadd.f32 1e-05, %v759_v47 }
 0x1bb   : > { %1221 = vrsqrt.f32 %v761_v48  ;;  %vm768_vm1 = vweird.f32 %v761_v48 }
 0x1c1   : > { %v1222_v49 = vpop.eup %1221 }
 0x1c2   : > { %v763_v50 = vmul.f32 %v1222_v49, %v761_v48  ;;  %vm769_vm0 = vweird.f32 %v1222_v49 }
 0x1c3   : > { %vm770_vm2 = vmor %vm768_vm1, %vm769_vm0 }
 0x1c4   : > { %v764_v51 = vmul.f32 %v1222_v49, %v763_v50 }
 0x1c6   : > { %v765_v52 = vmul.f32 0.5, %v764_v51 }
 0x1c8   : > { %v766_v53 = vsub.f32 1.5, %v765_v52 }
 0x1ca   : > { %v767_v54 = vmul.f32 %v1222_v49, %v766_v53 }
 0x1cc   : > { %v771_v57 = vsel %vm770_vm2, %v1222_v49, %v767_v54 }
 0x1cd   : > { %v772_v58 = vmul.f32 %v771_v57, %v760_v55 }
 0x1cf   : > { %v774_v60 = vmul.f32 %v773_v56, %v772_v58 }
 0x1d1   : > { %v776_v61 = vadd.f32 %v775_v59, %v774_v60 }
 0x1d3   : > { %v777_v62 = vmax.f32 %v776_v61, 0.0 }
 0x1d5   : > { %811 = vmatmul.f32.vlgmr.msra.gmra.mxu1 %v777_v62 }
 0x252   : > { %v812_v0 = vpop.f32.mrf.mxu1 }
 0x253   : > { %v813_v1 = vadd.f32 %v812_v0, %v794_v63 }
 0x255   : > { %815 = vst [vmem:[#allocation14] sm:$0xff] %v813_v1 }
 0x256 PF: > { %p1177_p3 = scmp.eq.s32.totalorder %s1556_s28, 1  ;;  %s1496_s29 = smov [#allocation14]  }
 0x257   : > { %s822_s13 = sshll.u32 %s1496_s29, 4  ;;  %s824_s10 = sshll.u32 %s1752_s6, 4  ;;  %s823_s13 = int_to_ptr.vmem [resolvable:$true] %s822_s13  ;;  %s825_s10 = int_to_ptr.hbm [resolvable:$true] %s824_s10 }
 0x258   : > { %1145 = dma.vmem_to_hbm [thread:$0]  (%p1177_p3), %s823_s13, 128, %s825_s10, [#allocation5]  }
 0x259   : > { %1468 = dma.done.wait (%p1177_p3), [#allocation5], 128  }
 0x25a   : > { %1470 = vsyncadd (%p1177_p3), [#allocation5], 4294967168 }
 0x25b PF: > { %p22_p4 = scmp.ge.s32.totalorder %s1592_s8, 4   ;;  %s1759_s21 = smov %s1477_s22 }
 0x25c   : > { %s1760_s22 = smov %s1481_s23  ;;  %s1761_s23 = smov %s1604_s12 }
 0x25d   : > { %s1762_s24 = smov %s1592_s8  ;;  %24 = sbr.rel (!%p22_p4) target bundleno = 10 (0xa), region = 118 }
 0x262   :  { %838 = vsyncpa [#allocation4], 1 }
 0x263   :  { %840 = vsyncpa [#allocation4 + $0x1], 1 }
 0x264   :  { %841 = vsyncpa [#allocation7], 1 }
 0x265   :  { %843 = vsyncpa [#allocation7 + $0x1], 1 }
 0x266   :  { %844 = vsyncpa [#allocation10], 1 }
 0x267   :  { %845 = vsyncpa [#allocation13], 1 }
 0x268   :  { %846 = vsyncpa [#allocation5], 1 }
 0x269   :  { %848 = vsyncpa [#allocation5 + $0x1], 1 }

</bundles_post_ra>
